<compile_context>
chip_gen: v7x
topology: tpu7x:2x2x1
jax: 0.10.0
libtpu: 0.0.40
codegen_flags: <defaults>
</compile_context>

<pallas_src>
import functools
import math

import jax
import jax.numpy as jnp
import numpy as np
from jax.experimental import pallas as pl
from jax.experimental.pallas import tpu as pltpu

H = 4          # number of heads
D_MODEL = 32   # model dim
D_K = D_MODEL // H
B = 2          # batch
S = 8          # sequence length


def mha_kernel(x_ref, w_in_ref, b_in_ref, wo_ref, bo_ref, o_ref, *, nb, ns, nh, dk):
    """Whole-batch MHA forward: fused QKV projection (scale pre-folded into the
    query block), per-head scaled-dot-product attention batched over the batch
    dim, head concat, output projection."""
    d = nh * dk

    # Fused input projection: one MXU push, (nb*ns, 3d) @ (3d, 3d) + bias.
    x = x_ref[...]                                            # (nb*ns, 3d)
    qkv = jnp.dot(x, w_in_ref[...],
                  preferred_element_type=jnp.float32) + b_in_ref[...]

    qp = qkv[:, 0:d]          # (nb*ns, d)  -- already scaled by 1/sqrt(dk)
    kp = qkv[:, d:2 * d]
    vp = qkv[:, 2 * d:3 * d]

    head_outs = []
    for h in range(nh):  # static unrolled loop over heads (nh = 4)
        # (nb*ns, dk) -> (nb, ns, dk): splits the leading/sublane dim only.
        qh = qp[:, h * dk:(h + 1) * dk].reshape(nb, ns, dk)
        kh = kp[:, h * dk:(h + 1) * dk].reshape(nb, ns, dk)
        vh = vp[:, h * dk:(h + 1) * dk].reshape(nb, ns, dk)

        # Batched scores; contracting the last dims avoids materializing kh.T.
        s = jnp.einsum("bqd,bkd->bqk", qh, kh,
                       preferred_element_type=jnp.float32)          # (nb, ns, ns)
        s = s - jnp.max(s, axis=-1, keepdims=True)                   # stable softmax
        p = jnp.exp(s)
        p = p * pl.reciprocal(jnp.sum(p, axis=-1, keepdims=True), approx=True)

        ctx_h = jnp.einsum("bqk,bkd->bqd", p, vh,
                           preferred_element_type=jnp.float32)       # (nb, ns, dk)
        head_outs.append(ctx_h.reshape(nb * ns, dk))

    ctx = jnp.concatenate(head_outs, axis=-1)                        # (nb*ns, d)
    out = jnp.dot(ctx, wo_ref[...],
                  preferred_element_type=jnp.float32) + bo_ref[...]  # (nb*ns, d)
    o_ref[...] = out


def multi_headed_attention(query, key, value, params):
    """params: dict of PyTorch-convention weights wq,wk,wv,wo (D,D) and biases (D,)."""
    Bn, Sn, Dn = query.shape
    assert Dn == D_MODEL and Dn % H == 0

    # Glue (runs once in XLA, outside the kernel):
    #  - block-diagonal fused input-projection weight (3D, 3D) and fused bias (1, 3D),
    #    with the 1/sqrt(d_k) attention scale folded into the query block
    #  - transposed output-projection weight (nn.Linear stores (out, in))
    #  - [query | key | value] concatenated on the feature dim, flattened to (B*S, 3D)
    scale = 1.0 / math.sqrt(Dn // H)
    wqT, wkT, wvT, woT = (params["wq"].T, params["wk"].T,
                          params["wv"].T, params["wo"].T)
    w_in = jnp.zeros((3 * Dn, 3 * Dn), jnp.float32)
    w_in = w_in.at[0:Dn, 0:Dn].set(wqT * scale)
    w_in = w_in.at[Dn:2 * Dn, Dn:2 * Dn].set(wkT)
    w_in = w_in.at[2 * Dn:, 2 * Dn:].set(wvT)
    b_in = jnp.concatenate(
        [params["bq"] * scale, params["bk"], params["bv"]]).reshape(1, 3 * Dn)
    b_out = params["bo"].reshape(1, Dn)
    x_cat = jnp.concatenate([query, key, value], axis=-1).reshape(Bn * Sn, 3 * Dn)

    kernel = functools.partial(mha_kernel, nb=Bn, ns=Sn, nh=H, dk=Dn // H)
    vmem = pl.BlockSpec(memory_space=pltpu.MemorySpace.VMEM)

    out_flat = pl.pallas_call(
        kernel,
        out_shape=jax.ShapeDtypeStruct((Bn * Sn, Dn), jnp.float32),
        in_specs=[vmem, vmem, vmem, vmem, vmem],
        out_specs=vmem,
    )(x_cat, w_in, b_in, woT, b_out)

    return out_flat.reshape(Bn, Sn, Dn)


def reference_mha(query, key, value, params):
    """Pure-JAX reference mirroring the PyTorch module (eval mode, no mask)."""
    def lin(x, w, b):
        return x @ w.T + b
    q = lin(query, params["wq"], params["bq"])
    k = lin(key, params["wk"], params["bk"])
    v = lin(value, params["wv"], params["bv"])
    Bn, Sn, Dn = q.shape

    def split(x):  # (B,S,D) -> (B,H,S,d_k)
        return x.reshape(Bn, Sn, H, D_K).transpose(0, 2, 1, 3)

    qh, kh, vh = split(q), split(k), split(v)
    scores = jnp.einsum("bhqd,bhkd->bhqk", qh, kh) / math.sqrt(D_K)
    p = jax.nn.softmax(scores, axis=-1)
    ctx = jnp.einsum("bhqk,bhkd->bhqd", p, vh)
    ctx = ctx.transpose(0, 2, 1, 3).reshape(Bn, Sn, Dn)
    return lin(ctx, params["wo"], params["bo"])


def init_params(key):
    """Deterministic init matching nn.Linear(d_model, d_model) shapes."""
    bound = 1.0 / math.sqrt(D_MODEL)
    names = ["q", "k", "v", "o"]
    keys = jax.random.split(key, 2 * len(names))
    params = {}
    for i, n in enumerate(names):
        params[f"w{n}"] = jax.random.uniform(
            keys[2 * i], (D_MODEL, D_MODEL), jnp.float32, -bound, bound)
        params[f"b{n}"] = jax.random.uniform(
            keys[2 * i + 1], (D_MODEL,), jnp.float32, -bound, bound)
    return params


if __name__ == "__main__":
    root = jax.random.PRNGKey(0)
    kq, kk, kv, kp = jax.random.split(root, 4)
    query = jax.random.normal(kq, (B, S, D_MODEL), jnp.float32)
    key_in = jax.random.normal(kk, (B, S, D_MODEL), jnp.float32)
    value = jax.random.normal(kv, (B, S, D_MODEL), jnp.float32)
    params = init_params(kp)

    out = multi_headed_attention(query, key_in, value, params)
    out = jax.block_until_ready(out)

    ref = reference_mha(query, key_in, value, params)
    # Tolerance is 2e-3 because the softmax denominator uses the hardware
    # approximate reciprocal (pl.reciprocal(..., approx=True)).
    np.testing.assert_allclose(np.asarray(out), np.asarray(ref), atol=2e-3, rtol=2e-3)

    print("KERNEL_OK")
</pallas_src>

<mosaic_0001>
module attributes {stable_mosaic.version = 11 : i64} {
  func.func @mha_kernel(%arg0: memref<16x96xf32, #tpu.memory_space<vmem>>, %arg1: memref<96x96xf32, #tpu.memory_space<vmem>>, %arg2: memref<1x96xf32, #tpu.memory_space<vmem>>, %arg3: memref<32x32xf32, #tpu.memory_space<vmem>>, %arg4: memref<1x32xf32, #tpu.memory_space<vmem>>, %arg5: memref<16x32xf32, #tpu.memory_space<vmem>>) attributes {dimension_semantics = [], scalar_prefetch = 0 : i64, scratch_operands = 0 : i64, tpu.core_type = #tpu.core_type<tc>} {
    %c0 = arith.constant 0 : index
    %c0_0 = arith.constant 0 : index
    %0 = vector.load %arg0[%c0, %c0_0] : memref<16x96xf32, #tpu.memory_space<vmem>>, vector<16x96xf32>
    %c0_1 = arith.constant 0 : index
    %c0_2 = arith.constant 0 : index
    %1 = vector.load %arg1[%c0_1, %c0_2] : memref<96x96xf32, #tpu.memory_space<vmem>>, vector<96x96xf32>
    %cst = arith.constant dense<0.000000e+00> : vector<16x96xf32>
    %2 = tpu.matmul %0, %1, %cst {dimension_numbers = #tpu.dot_dimension_numbers<[1], [0], [0], [1], [0, 0, 1, 1], [], []>} : vector<16x96xf32>, vector<96x96xf32>, vector<16x96xf32> -> vector<16x96xf32>
    %c0_3 = arith.constant 0 : index
    %c0_4 = arith.constant 0 : index
    %3 = vector.load %arg2[%c0_3, %c0_4] : memref<1x96xf32, #tpu.memory_space<vmem>>, vector<1x96xf32>
    %4 = vector.broadcast %3 : vector<1x96xf32> to vector<16x96xf32>
    %5 = arith.addf %2, %4 : vector<16x96xf32>
    %6 = vector.extract_strided_slice %5 {offsets = [0, 0], sizes = [16, 32], strides = [1, 1]} : vector<16x96xf32> to vector<16x32xf32>
    %7 = vector.extract_strided_slice %5 {offsets = [0, 32], sizes = [16, 32], strides = [1, 1]} : vector<16x96xf32> to vector<16x32xf32>
    %8 = vector.extract_strided_slice %5 {offsets = [0, 64], sizes = [16, 32], strides = [1, 1]} : vector<16x96xf32> to vector<16x32xf32>
    %9 = vector.extract_strided_slice %6 {offsets = [0, 0], sizes = [16, 8], strides = [1, 1]} : vector<16x32xf32> to vector<16x8xf32>
    %10 = vector.shape_cast %9 : vector<16x8xf32> to vector<2x8x8xf32>
    %11 = vector.extract_strided_slice %7 {offsets = [0, 0], sizes = [16, 8], strides = [1, 1]} : vector<16x32xf32> to vector<16x8xf32>
    %12 = vector.shape_cast %11 : vector<16x8xf32> to vector<2x8x8xf32>
    %13 = vector.extract_strided_slice %8 {offsets = [0, 0], sizes = [16, 8], strides = [1, 1]} : vector<16x32xf32> to vector<16x8xf32>
    %14 = vector.shape_cast %13 : vector<16x8xf32> to vector<2x8x8xf32>
    "tpu.trace_start"() <{level = 10 : i32, message = "bqd,bkd->bqk"}> : () -> ()
    %cst_5 = arith.constant dense<0.000000e+00> : vector<2x8x8xf32>
    %15 = tpu.matmul %10, %12, %cst_5 {dimension_numbers = #tpu.dot_dimension_numbers<[2], [2], [1], [1], [0, 0, 0, 1, 1, 1], [0], [0]>} : vector<2x8x8xf32>, vector<2x8x8xf32>, vector<2x8x8xf32> -> vector<2x8x8xf32>
    "tpu.trace_stop"() : () -> ()
    %cst_6 = arith.constant dense<0xFF800000> : vector<2x8xf32>
    %16 = vector.multi_reduction <maximumf>, %15, %cst_6 [2] : vector<2x8x8xf32> to vector<2x8xf32>
    %17 = vector.shape_cast %16 : vector<2x8xf32> to vector<2x8x1xf32>
    %18 = vector.broadcast %17 : vector<2x8x1xf32> to vector<2x8x8xf32>
    %19 = arith.subf %15, %18 : vector<2x8x8xf32>
    %20 = math.exp %19 : vector<2x8x8xf32>
    %cst_7 = arith.constant dense<0.000000e+00> : vector<2x8xf32>
    %21 = vector.multi_reduction <add>, %20, %cst_7 [2] : vector<2x8x8xf32> to vector<2x8xf32>
    %22 = vector.shape_cast %21 : vector<2x8xf32> to vector<2x8x1xf32>
    %23 = tpu.reciprocal %22 {approx = true} : vector<2x8x1xf32> -> vector<2x8x1xf32>
    %24 = vector.broadcast %23 : vector<2x8x1xf32> to vector<2x8x8xf32>
    %25 = arith.mulf %20, %24 : vector<2x8x8xf32>
    "tpu.trace_start"() <{level = 10 : i32, message = "bqk,bkd->bqd"}> : () -> ()
    %cst_8 = arith.constant dense<0.000000e+00> : vector<2x8x8xf32>
    %26 = tpu.matmul %25, %14, %cst_8 {dimension_numbers = #tpu.dot_dimension_numbers<[2], [1], [1], [2], [0, 0, 0, 1, 1, 2], [0], [0]>} : vector<2x8x8xf32>, vector<2x8x8xf32>, vector<2x8x8xf32> -> vector<2x8x8xf32>
    "tpu.trace_stop"() : () -> ()
    %27 = vector.shape_cast %26 : vector<2x8x8xf32> to vector<16x8xf32>
    %28 = vector.extract_strided_slice %6 {offsets = [0, 8], sizes = [16, 8], strides = [1, 1]} : vector<16x32xf32> to vector<16x8xf32>
    %29 = vector.shape_cast %28 : vector<16x8xf32> to vector<2x8x8xf32>
    %30 = vector.extract_strided_slice %7 {offsets = [0, 8], sizes = [16, 8], strides = [1, 1]} : vector<16x32xf32> to vector<16x8xf32>
    %31 = vector.shape_cast %30 : vector<16x8xf32> to vector<2x8x8xf32>
    %32 = vector.extract_strided_slice %8 {offsets = [0, 8], sizes = [16, 8], strides = [1, 1]} : vector<16x32xf32> to vector<16x8xf32>
    %33 = vector.shape_cast %32 : vector<16x8xf32> to vector<2x8x8xf32>
    "tpu.trace_start"() <{level = 10 : i32, message = "bqd,bkd->bqk"}> : () -> ()
    %cst_9 = arith.constant dense<0.000000e+00> : vector<2x8x8xf32>
    %34 = tpu.matmul %29, %31, %cst_9 {dimension_numbers = #tpu.dot_dimension_numbers<[2], [2], [1], [1], [0, 0, 0, 1, 1, 1], [0], [0]>} : vector<2x8x8xf32>, vector<2x8x8xf32>, vector<2x8x8xf32> -> vector<2x8x8xf32>
    "tpu.trace_stop"() : () -> ()
    %cst_10 = arith.constant dense<0xFF800000> : vector<2x8xf32>
    %35 = vector.multi_reduction <maximumf>, %34, %cst_10 [2] : vector<2x8x8xf32> to vector<2x8xf32>
    %36 = vector.shape_cast %35 : vector<2x8xf32> to vector<2x8x1xf32>
    %37 = vector.broadcast %36 : vector<2x8x1xf32> to vector<2x8x8xf32>
    %38 = arith.subf %34, %37 : vector<2x8x8xf32>
    %39 = math.exp %38 : vector<2x8x8xf32>
    %cst_11 = arith.constant dense<0.000000e+00> : vector<2x8xf32>
    %40 = vector.multi_reduction <add>, %39, %cst_11 [2] : vector<2x8x8xf32> to vector<2x8xf32>
    %41 = vector.shape_cast %40 : vector<2x8xf32> to vector<2x8x1xf32>
    %42 = tpu.reciprocal %41 {approx = true} : vector<2x8x1xf32> -> vector<2x8x1xf32>
    %43 = vector.broadcast %42 : vector<2x8x1xf32> to vector<2x8x8xf32>
    %44 = arith.mulf %39, %43 : vector<2x8x8xf32>
    "tpu.trace_start"() <{level = 10 : i32, message = "bqk,bkd->bqd"}> : () -> ()
    %cst_12 = arith.constant dense<0.000000e+00> : vector<2x8x8xf32>
    %45 = tpu.matmul %44, %33, %cst_12 {dimension_numbers = #tpu.dot_dimension_numbers<[2], [1], [1], [2], [0, 0, 0, 1, 1, 2], [0], [0]>} : vector<2x8x8xf32>, vector<2x8x8xf32>, vector<2x8x8xf32> -> vector<2x8x8xf32>
    "tpu.trace_stop"() : () -> ()
    %46 = vector.shape_cast %45 : vector<2x8x8xf32> to vector<16x8xf32>
    %47 = vector.extract_strided_slice %6 {offsets = [0, 16], sizes = [16, 8], strides = [1, 1]} : vector<16x32xf32> to vector<16x8xf32>
    %48 = vector.shape_cast %47 : vector<16x8xf32> to vector<2x8x8xf32>
    %49 = vector.extract_strided_slice %7 {offsets = [0, 16], sizes = [16, 8], strides = [1, 1]} : vector<16x32xf32> to vector<16x8xf32>
    %50 = vector.shape_cast %49 : vector<16x8xf32> to vector<2x8x8xf32>
    %51 = vector.extract_strided_slice %8 {offsets = [0, 16], sizes = [16, 8], strides = [1, 1]} : vector<16x32xf32> to vector<16x8xf32>
    %52 = vector.shape_cast %51 : vector<16x8xf32> to vector<2x8x8xf32>
    "tpu.trace_start"() <{level = 10 : i32, message = "bqd,bkd->bqk"}> : () -> ()
    %cst_13 = arith.constant dense<0.000000e+00> : vector<2x8x8xf32>
    %53 = tpu.matmul %48, %50, %cst_13 {dimension_numbers = #tpu.dot_dimension_numbers<[2], [2], [1], [1], [0, 0, 0, 1, 1, 1], [0], [0]>} : vector<2x8x8xf32>, vector<2x8x8xf32>, vector<2x8x8xf32> -> vector<2x8x8xf32>
    "tpu.trace_stop"() : () -> ()
    %cst_14 = arith.constant dense<0xFF800000> : vector<2x8xf32>
    %54 = vector.multi_reduction <maximumf>, %53, %cst_14 [2] : vector<2x8x8xf32> to vector<2x8xf32>
    %55 = vector.shape_cast %54 : vector<2x8xf32> to vector<2x8x1xf32>
    %56 = vector.broadcast %55 : vector<2x8x1xf32> to vector<2x8x8xf32>
    %57 = arith.subf %53, %56 : vector<2x8x8xf32>
    %58 = math.exp %57 : vector<2x8x8xf32>
    %cst_15 = arith.constant dense<0.000000e+00> : vector<2x8xf32>
    %59 = vector.multi_reduction <add>, %58, %cst_15 [2] : vector<2x8x8xf32> to vector<2x8xf32>
    %60 = vector.shape_cast %59 : vector<2x8xf32> to vector<2x8x1xf32>
    %61 = tpu.reciprocal %60 {approx = true} : vector<2x8x1xf32> -> vector<2x8x1xf32>
    %62 = vector.broadcast %61 : vector<2x8x1xf32> to vector<2x8x8xf32>
    %63 = arith.mulf %58, %62 : vector<2x8x8xf32>
    "tpu.trace_start"() <{level = 10 : i32, message = "bqk,bkd->bqd"}> : () -> ()
    %cst_16 = arith.constant dense<0.000000e+00> : vector<2x8x8xf32>
    %64 = tpu.matmul %63, %52, %cst_16 {dimension_numbers = #tpu.dot_dimension_numbers<[2], [1], [1], [2], [0, 0, 0, 1, 1, 2], [0], [0]>} : vector<2x8x8xf32>, vector<2x8x8xf32>, vector<2x8x8xf32> -> vector<2x8x8xf32>
    "tpu.trace_stop"() : () -> ()
    %65 = vector.shape_cast %64 : vector<2x8x8xf32> to vector<16x8xf32>
    %66 = vector.extract_strided_slice %6 {offsets = [0, 24], sizes = [16, 8], strides = [1, 1]} : vector<16x32xf32> to vector<16x8xf32>
    %67 = vector.shape_cast %66 : vector<16x8xf32> to vector<2x8x8xf32>
    %68 = vector.extract_strided_slice %7 {offsets = [0, 24], sizes = [16, 8], strides = [1, 1]} : vector<16x32xf32> to vector<16x8xf32>
    %69 = vector.shape_cast %68 : vector<16x8xf32> to vector<2x8x8xf32>
    %70 = vector.extract_strided_slice %8 {offsets = [0, 24], sizes = [16, 8], strides = [1, 1]} : vector<16x32xf32> to vector<16x8xf32>
    %71 = vector.shape_cast %70 : vector<16x8xf32> to vector<2x8x8xf32>
    "tpu.trace_start"() <{level = 10 : i32, message = "bqd,bkd->bqk"}> : () -> ()
    %cst_17 = arith.constant dense<0.000000e+00> : vector<2x8x8xf32>
    %72 = tpu.matmul %67, %69, %cst_17 {dimension_numbers = #tpu.dot_dimension_numbers<[2], [2], [1], [1], [0, 0, 0, 1, 1, 1], [0], [0]>} : vector<2x8x8xf32>, vector<2x8x8xf32>, vector<2x8x8xf32> -> vector<2x8x8xf32>
    "tpu.trace_stop"() : () -> ()
    %cst_18 = arith.constant dense<0xFF800000> : vector<2x8xf32>
    %73 = vector.multi_reduction <maximumf>, %72, %cst_18 [2] : vector<2x8x8xf32> to vector<2x8xf32>
    %74 = vector.shape_cast %73 : vector<2x8xf32> to vector<2x8x1xf32>
    %75 = vector.broadcast %74 : vector<2x8x1xf32> to vector<2x8x8xf32>
    %76 = arith.subf %72, %75 : vector<2x8x8xf32>
    %77 = math.exp %76 : vector<2x8x8xf32>
    %cst_19 = arith.constant dense<0.000000e+00> : vector<2x8xf32>
    %78 = vector.multi_reduction <add>, %77, %cst_19 [2] : vector<2x8x8xf32> to vector<2x8xf32>
    %79 = vector.shape_cast %78 : vector<2x8xf32> to vector<2x8x1xf32>
    %80 = tpu.reciprocal %79 {approx = true} : vector<2x8x1xf32> -> vector<2x8x1xf32>
    %81 = vector.broadcast %80 : vector<2x8x1xf32> to vector<2x8x8xf32>
    %82 = arith.mulf %77, %81 : vector<2x8x8xf32>
    "tpu.trace_start"() <{level = 10 : i32, message = "bqk,bkd->bqd"}> : () -> ()
    %cst_20 = arith.constant dense<0.000000e+00> : vector<2x8x8xf32>
    %83 = tpu.matmul %82, %71, %cst_20 {dimension_numbers = #tpu.dot_dimension_numbers<[2], [1], [1], [2], [0, 0, 0, 1, 1, 2], [0], [0]>} : vector<2x8x8xf32>, vector<2x8x8xf32>, vector<2x8x8xf32> -> vector<2x8x8xf32>
    "tpu.trace_stop"() : () -> ()
    %84 = vector.shape_cast %83 : vector<2x8x8xf32> to vector<16x8xf32>
    %85 = tpu.concatenate %27, %46, %65, %84 in 1 : vector<16x8xf32>, vector<16x8xf32>, vector<16x8xf32>, vector<16x8xf32> -> vector<16x32xf32>
    %c0_21 = arith.constant 0 : index
    %c0_22 = arith.constant 0 : index
    %86 = vector.load %arg3[%c0_21, %c0_22] : memref<32x32xf32, #tpu.memory_space<vmem>>, vector<32x32xf32>
    %cst_23 = arith.constant dense<0.000000e+00> : vector<16x32xf32>
    %87 = tpu.matmul %85, %86, %cst_23 {dimension_numbers = #tpu.dot_dimension_numbers<[1], [0], [0], [1], [0, 0, 1, 1], [], []>} : vector<16x32xf32>, vector<32x32xf32>, vector<16x32xf32> -> vector<16x32xf32>
    %c0_24 = arith.constant 0 : index
    %c0_25 = arith.constant 0 : index
    %88 = vector.load %arg4[%c0_24, %c0_25] : memref<1x32xf32, #tpu.memory_space<vmem>>, vector<1x32xf32>
    %89 = vector.broadcast %88 : vector<1x32xf32> to vector<16x32xf32>
    %90 = arith.addf %87, %89 : vector<16x32xf32>
    %c0_26 = arith.constant 0 : index
    %c0_27 = arith.constant 0 : index
    %91 = vector.load %arg5[%c0_26, %c0_27] : memref<16x32xf32, #tpu.memory_space<vmem>>, vector<16x32xf32>
    tpu.vector_store %arg5[%c0_26, %c0_27], %90 {strides = array<i32>} : memref<16x32xf32, #tpu.memory_space<vmem>>, vector<16x32xf32>,
    return
  }
}

</mosaic_0001>

<bundles_post_ra>
// kernel: tpu_custom_call.1
= control target key start
LH: loop header
LB: loop body
LE: loop exit
PB: predicated region body
PF: predicated region fallthrough
CT: control target
= control target key end

     0   :  { %10 = vsyncpa [#allocation3], 0  ;;  %s2270_s0 = inlined_call_operand.hbm [shape: f32[16,96], index: 0, kind: input, shape index: {}]   ;;  %s2271_s1 = inlined_call_operand.hbm [shape: f32[96,96], index: 1, kind: input, shape index: {}]   ;;  %s2272_s2 = inlined_call_operand.vmem [shape: f32[1,96], index: 2, kind: input, shape index: {}]   ;;  %s2273_s3 = inlined_call_operand.hbm [shape: f32[32,32], index: 3, kind: input, shape index: {}]   ;;  %s2274_s4 = inlined_call_operand.vmem [shape: f32[1,32], index: 4, kind: input, shape index: {}]   ;;  %s2275_s5 = inlined_call_operand.hbm [shape: f32[16,32], index: 5, kind: output, shape index: {}]  }
   0x1   :  { %11 = vsyncpa [#allocation6], 0 }
   0x2   :  { %12 = vsyncpa [#allocation4], 0  ;;  %s2008_s18 = smov [#allocation5]   ;;  %s2009_s20 = smov [#allocation2]  }
   0x3   :  { %s30_s19 = sshll.u32 %s2008_s18, 4  ;;  %s18_s21 = sshll.u32 %s2009_s20, 4  ;;  %s31_s19 = int_to_ptr.vmem [resolvable:$true] %s30_s19  ;;  %s2059_s21 = int_to_ptr.vmem [resolvable:$true] %s18_s21 }
   0x4   :  { %s1914_s24 = scalar_lea.hbm %s2271_s1, 1536 }
   0x5   :  { %p1915_p0 = scmp.ne.s32.totalorder %s2271_s1, %s1914_s24  ;;  %p1918_p1 = scmp.lt.u32.totalorder %s1914_s24, %s2271_s1 }
   0x7   :  { %p1920_p2 = pnand %p1918_p1, %p1915_p0 }
   0x9   :  { %1923 = shalt.err (!%p1920_p2)
}
   0xa   :  { %s1924_s29 = scalar_lea.vmem %s31_s19, 1536  ;;  %p1929_p4 = scmp.lt.s32.totalorder %s31_s19, %s31_s19 }
   0xb   :  { %p1925_p3 = scmp.ne.s32.totalorder %s31_s19, %s1924_s29  ;;  %p1930_p5 = scmp.lt.s32.totalorder %s1924_s29, %s1924_s29 }
   0xd   :  { %p1931_p6 = por %p1930_p5, %p1929_p4 }
   0xf   :  { %p1932_p7 = pnand %p1931_p6, %p1925_p3 }
  0x11   :  { %1935 = shalt.err (!%p1932_p7)
}
  0x12   :  { %s2010_s30 = smov 128   ;;  %s2011_s6 = smov 8  }
  0x13   :  { %36 = dma.hbm_to_vmem [thread:$0]  %s2271_s1, 1536, %s31_s19, [#allocation6], %s2010_s30, %s2010_s30, %s2011_s6  }
  0x14   :  { %s1936_s11 = scalar_lea.hbm %s2270_s0, 256 }
  0x15   :  { %p1937_p8 = scmp.ne.s32.totalorder %s2270_s0, %s1936_s11  ;;  %p1940_p9 = scmp.lt.u32.totalorder %s1936_s11, %s2270_s0 }
  0x17   :  { %p1942_p10 = pnand %p1940_p9, %p1937_p8 }
  0x19   :  { %1945 = shalt.err (!%p1942_p10)
}
  0x1a   :  { %s1946_s16 = scalar_lea.vmem %s2059_s21, 256  ;;  %p1951_p12 = scmp.lt.s32.totalorder %s2059_s21, %s2059_s21 }
  0x1b   :  { %p1947_p11 = scmp.ne.s32.totalorder %s2059_s21, %s1946_s16  ;;  %p1952_p13 = scmp.lt.s32.totalorder %s1946_s16, %s1946_s16 }
  0x1d   :  { %p1953_p0 = por %p1952_p13, %p1951_p12 }
  0x1f   :  { %p1954_p1 = pnand %p1953_p0, %p1947_p11 }
  0x21   :  { %1957 = shalt.err (!%p1954_p1)
}
  0x22   :  { %24 = dma.hbm_to_vmem [thread:$0]  %s2270_s0, 256, %s2059_s21, [#allocation3], %s2010_s30, %s2010_s30, %s2011_s6  }
  0x23   :  { %s2012_s18 = smov [#allocation7]   ;;  %s1958_s23 = scalar_lea.hbm %s2273_s3, 512 }
  0x24   :  { %s44_s19 = sshll.u32 %s2012_s18, 4  ;;  %p1959_p2 = scmp.ne.s32.totalorder %s2273_s3, %s1958_s23  ;;  %s45_s19 = int_to_ptr.vmem [resolvable:$true] %s44_s19 }
  0x25   :  { %p1962_p3 = scmp.lt.u32.totalorder %s1958_s23, %s2273_s3 }
  0x27   :  { %p1964_p4 = pnand %p1962_p3, %p1959_p2 }
  0x29   :  { %1967 = shalt.err (!%p1964_p4)
}
  0x2a   :  { %s1968_s28 = scalar_lea.vmem %s45_s19, 512  ;;  %p1973_p6 = scmp.lt.s32.totalorder %s45_s19, %s45_s19 }
  0x2b   :  { %p1969_p5 = scmp.ne.s32.totalorder %s45_s19, %s1968_s28  ;;  %p1974_p7 = scmp.lt.s32.totalorder %s1968_s28, %s1968_s28 }
  0x2d   :  { %p1975_p8 = por %p1974_p7, %p1973_p6 }
  0x2f   :  { %p1976_p9 = pnand %p1975_p8, %p1969_p5 }
  0x31   :  { %1979 = shalt.err (!%p1976_p9)
}
  0x32   :  { %50 = dma.hbm_to_vmem [thread:$0]  %s2273_s3, 512, %s45_s19, [#allocation6], %s2010_s30, %s2010_s30, %s2011_s6  }
  0x33   :  { %2002 = dma.done.wait [#allocation3], 256  }
  0x34   :  { %2003 = vsyncadd [#allocation3], 4294967040 }
  0x35   :  { %2004 = dma.done.wait [#allocation6], 2048  }
  0x36   :  { %2005 = vsyncadd [#allocation6], 4294965248  ;;  %v64_v0 = vld [vmem:[#allocation5] sm:$0xff]  ;;  %v65_v1 = vld [vmem:[#allocation5 + $0x8] sm:$0xff]  ;;  %vm83_vm0 = vcmask 785408   ;;  %v2013_v20 = vmov 0.0  }
  0x37   :  { %v66_v2 = vld [vmem:[#allocation5 + $0x10] sm:$0xff]  ;;  %v1829_v3 = vpack.c.bf16 %v65_v1, %v64_v0  ;;  %v67_v4 = vld [vmem:[#allocation5 + $0x18] sm:$0xff]  ;;  %v68_v6 = vld [vmem:[#allocation5 + $0x20] sm:$0xff]  ;;  %1738 = vmatprep.subr.mxu1 %v2013_v20  ;;  %vm2014_vm1 = vmmov 0   ;;  %s2015_s7 = smov 96   ;;  %vm168_vm2 = vcmask 64512  }
  0x38   :  { %v1833_v5 = vpack.c.bf16 %v67_v4, %v66_v2  ;;  %v69_v7 = vld [vmem:[#allocation5 + $0x28] sm:$0xff]  ;;  %v62_v8 = vld [vmem:[#allocation2] sm:$0xff]  ;;  %v71_v11 = vld [vmem:[#allocation5 + $0x38] sm:$0xff]  ;;  %1740 = vmatprep.mubr.msk.f32.mxu1 %vm2014_vm1, %v2013_v20  ;;  %s2017_s8 = smov 88   ;;  %s2018_s9 = smov 120   ;;  %vm1513_vm3 = vcmask 195584  }
  0x39   :  { %1830 = vmatprep.subr.bf16.mxu0 %v1829_v3  ;;  %v1837_v9 = vpack.c.bf16 %v69_v7, %v68_v6  ;;  %1735 = vmatprep.mubr.msk.f32.mxu0 %vm83_vm0, %v62_v8  ;;  %v70_v10 = vld [vmem:[#allocation5 + $0x30] sm:$0xff]  ;;  %v72_v13 = vld [vmem:[#allocation5 + $0x40] sm:$0xff]  ;;  %v73_v14 = vld [vmem:[#allocation5 + $0x48] sm:$0xff]  ;;  %s2019_s10 = smov 56   ;;  %s2020_s11 = smov 80   ;;  %vm1510_vm4 = vcmask 130048  }
  0x3a   :  { %1832 = vmatpush3.bf16.msra.mxu0 %v1829_v3  ;;  %v1841_v12 = vpack.c.bf16 %v71_v11, %v70_v10  ;;  %v1845_v15 = vpack.c.bf16 %v73_v14, %v72_v13  ;;  %v74_v16 = vld [vmem:[#allocation5 + $0x50] sm:$0xff]  ;;  %v75_v17 = vld [vmem:[#allocation5 + $0x58] sm:$0xff]  ;;  %s2021_s12 = smov 112   ;;  %s2022_s13 = smov 48   ;;  %vm1527_vm5 = vcmask 261120  }
  0x3b   :  { %1834 = vmatprep.subr.bf16.mxu0 %v1833_v5  ;;  %v1849_v18 = vpack.c.bf16 %v75_v17, %v74_v16  ;;  %v63_v19 = vld [vmem:[#allocation2 + $0x8] sm:$0xff]  ;;  %v1629_v21 = vld [vmem:[%s2272_s2] ss:$0 sm:$0xff]  ;;  %s2016_s2 = smov 64   ;;  %s2023_s14 = smov 72  }
  0x3c   :  { %s2024_s15 = smov 104   ;;  %s2025_s16 = smov 40  }
  0x3d   :  { %s2026_s1 = smov 16   ;;  %s2027_s17 = smov 24  }
  0x3e   :  { %1836 = vmatpush3.bf16.msra.mxu0 %v1833_v5  ;;  %s2028_s20 = smov [#allocation8]  }
  0x3f   :  { %1838 = vmatprep.subr.bf16.mxu0 %v1837_v9  ;;  %s1616_s22 = sshll.u32 %s2028_s20, 4  ;;  %s1617_s22 = int_to_ptr.vmem [resolvable:$true] %s1616_s22 }
  0x40   :  { %s1980_s23 = scalar_lea.vmem %s1617_s22, 256  ;;  %p1985_p11 = scmp.lt.s32.totalorder %s1617_s22, %s1617_s22 }
  0x41   :  { %p1981_p10 = scmp.ne.s32.totalorder %s1617_s22, %s1980_s23  ;;  %p1986_p12 = scmp.lt.s32.totalorder %s1980_s23, %s1980_s23 }
  0x42   :  { %1840 = vmatpush3.bf16.msra.mxu0 %v1837_v9 }
  0x43   :  { %1842 = vmatprep.subr.bf16.mxu0 %v1841_v12  ;;  %p1987_p13 = por %p1986_p12, %p1985_p11 }
  0x45   :  { %p1988_p0 = pnand %p1987_p13, %p1981_p10 }
  0x46   :  { %1844 = vmatpush3.bf16.msra.mxu0 %v1841_v12 }
  0x47   :  { %1846 = vmatprep.subr.bf16.mxu0 %v1845_v15 }
  0x4a   :  { %1848 = vmatpush3.bf16.msra.mxu0 %v1845_v15 }
  0x4b   :  { %1850 = vmatprep.subr.bf16.mxu0 %v1849_v18 }
  0x4e   :  { %1852 = vmatpush3.bf16.msra.mxu0 %v1849_v18 }
  0x4f   :  { %1778 = vmatprep.subr.mxu0 %v2013_v20 }
  0x51   :  { %1736 = vmatmul.mubr.msk.f32.vlgmr.msra.gmra.mrb[0].mxu0 %vm83_vm0, %v63_v19 }
  0x52   :  { %1780 = vmatprep.mubr.msk.f32.mxu0 %vm2014_vm1, %v2013_v20 }
 0x124   :  { %v1737_v22 = vpop.f32.mrb[0].mxu0 }
 0x125   :  { %v156_v23 = vpop.f32.mrb[1].mxu0  ;;  %v2125_v25 = vadd.f32 %v1737_v22, %v1629_v21 }
 0x126   :  { %v2122_v24 = vadd.f32 %v1629_v21, %v156_v23 }
 0x128   :  { %166 = vrot.lane.b32.xlu0 %v2122_v24, %s2015_s7 }
 0x12c   :  { %244 = vrot.lane.b32.xlu0 %v2125_v25, %s2015_s7 }
 0x19a   :  { %v167_v26 = vpop.permute.xlu0 %166 }
 0x19b   :  { %1739 = vmatpush3.xpose.msk.msra.mxu1 %vm168_vm2, %v167_v26 }
 0x19c   :  { %1743 = vmatprep.subr.mxu1 %v2013_v20 }
 0x19e   :  { %1741 = vmatmul.mubr.msk.f32.vlgmr.msra.gmra.mrb[0].mxu1 %vm168_vm2, %v2122_v24  ;;  %v245_v27 = vpop.permute.xlu0 %244 }
 0x19f   :  { %1744 = vmatpush3.xpose.msk.msra.mxu1 %vm168_vm2, %v245_v27  ;;  %1745 = vmatprep.mubr.msk.f32.mxu1 %vm2014_vm1, %v2013_v20 }
 0x1a0   :  { %1748 = vmatprep.subr.mxu1 %v2013_v20 }
 0x1a2   :  { %1746 = vmatmul.mubr.msk.f32.vlgmr.msra.gmra.mrb[2].mxu1 %vm168_vm2, %v2125_v25 }
 0x1a3   :  { %1750 = vmatprep.mubr.msk.f32.mxu1 %vm2014_vm1, %v2013_v20 }
 0x271   :  { %v239_v28 = vpop.f32.mrb[0].mxu1 }
 0x272   :  { %v1742_v29 = vpop.f32.mrb[1].mxu1  ;;  %v320_v30 = vsel %vm168_vm2, %v239_v28, -inf }
 0x273   :  { %321 = vmax.xlane.f32.xlu1 %v320_v30 }
 0x275   :  { %v316_v31 = vpop.f32.mrb[2].mxu1 }
 0x276   :  { %v1747_v32 = vpop.f32.mrb[3].mxu1  ;;  %v323_v33 = vsel %vm168_vm2, %v316_v31, -inf }
 0x277   :  { %324 = vmax.xlane.f32.xlu1 %v323_v33 }
 0x288   :  { %342 = vrot.lane.b32.xlu1 %v2122_v24, %s2016_s2 }
 0x28c   :  { %418 = vrot.lane.b32.xlu1 %v2125_v25, %s2016_s2 }
 0x290   :  { %496 = vrot.lane.b32.xlu1 %v2122_v24, %s2017_s8 }
 0x300   :  { %v322_v34 = vpop.xlane.xlu1 %321 }
 0x301   :  { %v326_v35 = vsub.f32 %v239_v28, %v322_v34 }
 0x303   :  { %v328_v36 = vmul.f32 1.442695, %v326_v35 }
 0x304   :  { %v325_v37 = vpop.xlane.xlu1 %324 }
 0x305   :  { %1882 = vpow2.f32 %v328_v36  ;;  %v327_v38 = vsub.f32 %v316_v31, %v325_v37 }
 0x307   :  { %v330_v39 = vmul.f32 1.442695, %v327_v38 }
 0x308   :  { %v343_v40 = vpop.permute.xlu1 %342 }
 0x309   :  { %1884 = vpow2.f32 %v330_v39  ;;  %1749 = vmatpush3.msra.mxu1 %v343_v40 }
 0x30a   :  { %1753 = vmatprep.subr.mxu1 %v2013_v20 }
 0x30c   :  { %v419_v45 = vpop.permute.xlu1 %418 }
 0x30f   :  { %v1883_v41 = vpop.eup %1882 }
 0x310   :  { %v332_v42 = vsel %vm168_vm2, %v1883_v41, 0.0  ;;  %v497_v46 = vpop.permute.xlu1 %496 }
 0x311   :  { %333 = vadd.xlane.f32.xlu0 %v332_v42 }
 0x313   :  { %v1885_v43 = vpop.eup %1884 }
 0x314   :  { %v335_v44 = vsel %vm168_vm2, %v1885_v43, 0.0 }
 0x315   :  { %336 = vadd.xlane.f32.xlu1 %v335_v44 }
 0x326   :  { %494 = vrot.lane.b32.xlu1 %v2122_v24, %s2018_s9 }
 0x327   :  { %574 = vrot.lane.b32.xlu0 %v2125_v25, %s2017_s8 }
 0x32a   :  { %572 = vrot.lane.b32.xlu1 %v2125_v25, %s2018_s9 }
 0x39e   :  { %v334_v47 = vpop.xlane.xlu0 %333 }
 0x39f   :  { %1886 = vrcp.f32 %v334_v47 }
 0x3a2   :  { %v337_v48 = vpop.xlane.xlu1 %336  ;;  %v575_v54 = vpop.permute.xlu0 %574 }
 0x3a3   :  { %1888 = vrcp.f32 %v337_v48 }
 0x3a6   :  { %v495_v53 = vpop.permute.xlu1 %494 }
 0x3a9   :  { %v1887_v49 = vpop.eup %1886 }
 0x3aa   :  { %v340_v50 = vmul.f32 %v1887_v49, %v1883_v41  ;;  %v573_v55 = vpop.permute.xlu1 %572 }
 0x3ac   :  { %1751 = vmatmul.mubr.msk.f32.vlgmr.msra.gmra.mrb[4].mxu1 %vm168_vm2, %v340_v50 }
 0x3ad   :  { %v1889_v51 = vpop.eup %1888  ;;  %1754 = vmatpush3.msra.mxu1 %v419_v45  ;;  %1755 = vmatprep.mubr.msk.f32.mxu1 %vm2014_vm1, %v2013_v20 }
 0x3ae   :  { %v341_v52 = vmul.f32 %v1889_v51, %v1885_v43  ;;  %1758 = vmatprep.subr.mxu1 %v2013_v20 }
 0x3b0   :  { %1756 = vmatmul.mubr.msk.f32.vlgmr.msra.gmra.mrb[6].mxu1 %vm168_vm2, %v341_v52 }
 0x3b1   :  { %1760 = vmatprep.mubr.msk.f32.mxu1 %vm2014_vm1, %v2013_v20 }
 0x3b4   :  { %1759 = vmatpush3.xpose.msk.msra.mxu1 %vm168_vm2, %v497_v46 }
 0x3b5   :  { %1763 = vmatprep.subr.mxu1 %v2013_v20 }
 0x3b7   :  { %1761 = vmatmul.mubr.msk.f32.vlgmr.msra.gmra.mrb[8].mxu1 %vm168_vm2, %v495_v53 }
 0x3b8   :  { %1764 = vmatpush3.xpose.msk.msra.mxu1 %vm168_vm2, %v575_v54  ;;  %1765 = vmatprep.mubr.msk.f32.mxu1 %vm2014_vm1, %v2013_v20 }
 0x3b9   :  { %1768 = vmatprep.subr.mxu1 %v2013_v20 }
 0x3bb   :  { %1766 = vmatmul.mubr.msk.f32.vlgmr.msra.gmra.mrb[10].mxu1 %vm168_vm2, %v573_v55 }
 0x3bc   :  { %1770 = vmatprep.mubr.msk.f32.mxu1 %vm2014_vm1, %v2013_v20 }
 0x47f   :  { %v2168_v56 = vpop.f32.mrb[4].mxu1 }
 0x480   :  { %v1752_v57 = vpop.f32.mrb[5].mxu1 }
 0x483   :  { %v2170_v58 = vpop.f32.mrb[6].mxu1 }
 0x484   :  { %v1757_v59 = vpop.f32.mrb[7].mxu1 }
 0x48a   :  { %v568_v60 = vpop.f32.mrb[8].mxu1 }
 0x48b   :  { %v1762_v61 = vpop.f32.mrb[9].mxu1  ;;  %v650_v62 = vsel %vm168_vm2, %v568_v60, -inf }
 0x48c   :  { %651 = vmax.xlane.f32.xlu1 %v650_v62 }
 0x48e   :  { %v646_v63 = vpop.f32.mrb[10].mxu1 }
 0x48f   :  { %v1767_v0 = vpop.f32.mrb[11].mxu1  ;;  %v653_v1 = vsel %vm168_vm2, %v646_v63, -inf }
 0x490   :  { %654 = vmax.xlane.f32.xlu0 %v653_v1 }
 0x49d   :  { %672 = vrot.lane.b32.xlu1 %v2122_v24, %s2019_s10 }
 0x4a1   :  { %826 = vrot.lane.b32.xlu1 %v2122_v24, %s2020_s11 }
 0x4a5   :  { %904 = vrot.lane.b32.xlu1 %v2125_v25, %s2020_s11 }
 0x4a6   :  { %748 = vrot.lane.b32.xlu0 %v2125_v25, %s2019_s10 }
 0x4aa   :  { %824 = vrot.lane.b32.xlu0 %v2122_v24, %s2021_s12 }
 0x519   :  { %v652_v2 = vpop.xlane.xlu1 %651 }
 0x51a   :  { %v656_v3 = vsub.f32 %v568_v60, %v652_v2 }
 0x51c   :  { %v658_v4 = vmul.f32 1.442695, %v656_v3 }
 0x51d   :  { %v673_v5 = vpop.permute.xlu1 %672  ;;  %v655_v6 = vpop.xlane.xlu0 %654 }
 0x51e   :  { %1890 = vpow2.f32 %v658_v4  ;;  %v657_v7 = vsub.f32 %v646_v63, %v655_v6  ;;  %1769 = vmatpush3.msra.mxu1 %v673_v5 }
 0x51f   :  { %1773 = vmatprep.subr.mxu1 %v2013_v20 }
 0x520   :  { %v660_v8 = vmul.f32 1.442695, %v657_v7 }
 0x521   :  { %v827_v9 = vpop.permute.xlu1 %826  ;;  %v749_v10 = vpop.permute.xlu0 %748 }
 0x522   :  { %1892 = vpow2.f32 %v660_v8  ;;  %1779 = vmatpush3.xpose.msk.msra.mxu0 %vm168_vm2, %v827_v9 }
 0x523   :  { %1788 = vmatprep.subr.mxu0 %v2013_v20 }
 0x525   :  { %v825_v11 = vpop.permute.xlu0 %824  ;;  %v905_v16 = vpop.permute.xlu1 %904 }
 0x526   :  { %1781 = vmatmul.mubr.msk.f32.vlgmr.msra.gmra.mrb[2].mxu0 %vm168_vm2, %v825_v11 }
 0x527   :  { %1790 = vmatprep.mubr.msk.f32.mxu0 %vm2014_vm1, %v2013_v20 }
 0x528   :  { %v1891_v12 = vpop.eup %1890 }
 0x529   :  { %v662_v13 = vsel %vm168_vm2, %v1891_v12, 0.0 }
 0x52a   :  { %663 = vadd.xlane.f32.xlu1 %v662_v13 }
 0x52c   :  { %v1893_v14 = vpop.eup %1892 }
 0x52d   :  { %v665_v15 = vsel %vm168_vm2, %v1893_v14, 0.0 }
 0x52e   :  { %666 = vadd.xlane.f32.xlu1 %v665_v15 }
 0x53f   :  { %902 = vrot.lane.b32.xlu1 %v2125_v25, %s2021_s12 }
 0x5b7   :  { %v664_v17 = vpop.xlane.xlu1 %663 }
 0x5b8   :  { %1894 = vrcp.f32 %v664_v17 }
 0x5bb   :  { %v667_v18 = vpop.xlane.xlu1 %666 }
 0x5bc   :  { %1896 = vrcp.f32 %v667_v18 }
 0x5bf   :  { %v903_v26 = vpop.permute.xlu1 %902 }
 0x5c2   :  { %v1895_v19 = vpop.eup %1894 }
 0x5c3   :  { %v670_v21 = vmul.f32 %v1895_v19, %v1891_v12 }
 0x5c5   :  { %1771 = vmatmul.mubr.msk.f32.vlgmr.msra.gmra.mrb[12].mxu1 %vm168_vm2, %v670_v21 }
 0x5c6   :  { %v1897_v22 = vpop.eup %1896  ;;  %1774 = vmatpush3.msra.mxu1 %v749_v10  ;;  %1775 = vmatprep.mubr.msk.f32.mxu1 %vm2014_vm1, %v2013_v20 }
 0x5c7   :  { %v671_v23 = vmul.f32 %v1897_v22, %v1893_v14  ;;  %1783 = vmatprep.subr.mxu1 %v2013_v20 }
 0x5c9   :  { %1776 = vmatmul.mubr.msk.f32.vlgmr.msra.gmra.mrb[14].mxu1 %vm168_vm2, %v671_v23 }
 0x5ca   :  { %1785 = vmatprep.mubr.msk.f32.mxu1 %vm2014_vm1, %v2013_v20 }
 0x5cd   :  { %1784 = vmatpush3.xpose.msk.msra.mxu1 %vm168_vm2, %v905_v16 }
 0x5ce   :  { %1793 = vmatprep.subr.mxu1 %v2013_v20 }
 0x5d0   :  { %1786 = vmatmul.mubr.msk.f32.vlgmr.msra.gmra.mrb[16].mxu1 %vm168_vm2, %v903_v26  ;;  %v1516_v26 = vld [vmem:[#allocation7] sm:$0xff] }
 0x5d1   :  { %1795 = vmatprep.mubr.msk.f32.mxu1 %vm2014_vm1, %v2013_v20 }
 0x5f9   :  { %v898_v27 = vpop.f32.mrb[2].mxu0 }
 0x5fa   :  { %v1782_v28 = vpop.f32.mrb[3].mxu0  ;;  %v980_v29 = vsel %vm168_vm2, %v898_v27, -inf }
 0x5fb   :  { %981 = vmax.xlane.f32.xlu0 %v980_v29  ;;  %v1518_v28 = vld [vmem:[#allocation7 + $0x10] sm:$0xff] }
 0x688   :  { %v982_v30 = vpop.xlane.xlu0 %981 }
 0x689   :  { %v986_v31 = vsub.f32 %v898_v27, %v982_v30  ;;  %v1517_v27 = vld [vmem:[#allocation7 + $0x8] sm:$0xff] }
 0x68a   :  { %v1853_v29 = vpack.c.bf16 %v1517_v27, %v1516_v26 }
 0x68b   :  { %v988_v32 = vmul.f32 1.442695, %v986_v31 }
 0x68d   :  { %1898 = vpow2.f32 %v988_v32 }
 0x697   :  { %v1899_v33 = vpop.eup %1898 }
 0x698   :  { %v2201_v34 = vpop.f32.mrb[12].mxu1  ;;  %v992_v35 = vsel %vm168_vm2, %v1899_v33, 0.0 }
 0x699   :  { %993 = vadd.xlane.f32.xlu0 %v992_v35  ;;  %v1772_v36 = vpop.f32.mrb[13].mxu1 }
 0x69c   :  { %v2204_v37 = vpop.f32.mrb[14].mxu1 }
 0x69d   :  { %v1777_v38 = vpop.f32.mrb[15].mxu1 }
 0x6a3   :  { %v976_v39 = vpop.f32.mrb[16].mxu1 }
 0x6a4   :  { %v1787_v40 = vpop.f32.mrb[17].mxu1  ;;  %v983_v41 = vsel %vm168_vm2, %v976_v39, -inf }
 0x6a5   :  { %984 = vmax.xlane.f32.xlu1 %v983_v41 }
 0x6af   :  { %1078 = vrot.lane.b32.xlu0 %v2125_v25, %s2022_s13 }
 0x6b6   :  { %1002 = vrot.lane.b32.xlu1 %v2122_v24, %s2022_s13 }
 0x6ba   :  { %1156 = vrot.lane.b32.xlu1 %v2122_v24, %s2023_s14 }
 0x6be   :  { %1234 = vrot.lane.b32.xlu1 %v2125_v25, %s2023_s14 }
 0x6c2   :  { %1232 = vrot.lane.b32.xlu1 %v2125_v25, %s2024_s15 }
 0x726   :  { %v994_v42 = vpop.xlane.xlu0 %993 }
 0x727   :  { %1900 = vrcp.f32 %v994_v42 }
 0x72a   :  { %v1079_v43 = vpop.permute.xlu0 %1078 }
 0x72b   :  { %1794 = vmatpush3.msra.mxu1 %v1079_v43 }
 0x72c   :  { %1803 = vmatprep.subr.mxu1 %v2013_v20 }
 0x731   :  { %v1901_v45 = vpop.eup %1900 }
 0x732   :  { %v985_v44 = vpop.xlane.xlu1 %984  ;;  %v1000_v48 = vmul.f32 %v1901_v45, %v1899_v33 }
 0x733   :  { %v987_v46 = vsub.f32 %v976_v39, %v985_v44 }
 0x735   :  { %v990_v47 = vmul.f32 1.442695, %v987_v46 }
 0x736   :  { %v1003_v49 = vpop.permute.xlu1 %1002 }
 0x737   :  { %1902 = vpow2.f32 %v990_v47  ;;  %1789 = vmatpush3.msra.mxu0 %v1003_v49 }
 0x738   :  { %1791 = vmatmul.mubr.msk.f32.vlgmr.msra.gmra.mrb[4].mxu0 %vm168_vm2, %v1000_v48  ;;  %1798 = vmatprep.subr.mxu0 %v2013_v20 }
 0x739   :  { %1800 = vmatprep.mubr.msk.f32.mxu0 %vm2014_vm1, %v2013_v20 }
 0x73a   :  { %v1157_v50 = vpop.permute.xlu1 %1156 }
 0x73e   :  { %1799 = vmatpush3.xpose.msk.msra.mxu0 %vm168_vm2, %v1157_v50  ;;  %v1235_v57 = vpop.permute.xlu1 %1234 }
 0x73f   :  { %1808 = vmatprep.subr.mxu0 %v2013_v20 }
 0x741   :  { %v1903_v51 = vpop.eup %1902 }
 0x742   :  { %v995_v52 = vsel %vm168_vm2, %v1903_v51, 0.0  ;;  %v1233_v60 = vpop.permute.xlu1 %1232 }
 0x743   :  { %996 = vadd.xlane.f32.xlu0 %v995_v52 }
 0x759   :  { %1154 = vrot.lane.b32.xlu0 %v2122_v24, %s2024_s15 }
 0x7d0   :  { %v997_v53 = vpop.xlane.xlu0 %996 }
 0x7d1   :  { %1904 = vrcp.f32 %v997_v53 }
 0x7d4   :  { %v1155_v54 = vpop.permute.xlu0 %1154 }
 0x7d5   :  { %1801 = vmatmul.mubr.msk.f32.vlgmr.msra.gmra.mrb[6].mxu0 %vm168_vm2, %v1155_v54 }
 0x7d6   :  { %1810 = vmatprep.mubr.msk.f32.mxu0 %vm2014_vm1, %v2013_v20 }
 0x7db   :  { %v1905_v55 = vpop.eup %1904 }
 0x7dc   :  { %v1001_v59 = vmul.f32 %v1905_v55, %v1903_v51 }
 0x7de   :  { %1796 = vmatmul.mubr.msk.f32.vlgmr.msra.gmra.mrb[18].mxu1 %vm168_vm2, %v1001_v59 }
 0x7df   :  { %1804 = vmatpush3.xpose.msk.msra.mxu1 %vm168_vm2, %v1235_v57  ;;  %1805 = vmatprep.mubr.msk.f32.mxu1 %vm2014_vm1, %v2013_v20 }
 0x7e0   :  { %1813 = vmatprep.subr.mxu1 %v2013_v20 }
 0x7e2   :  { %1806 = vmatmul.mubr.msk.f32.vlgmr.msra.gmra.mrb[20].mxu1 %vm168_vm2, %v1233_v60 }
 0x7e3   :  { %1815 = vmatprep.mubr.msk.f32.mxu1 %vm2014_vm1, %v2013_v20 }
 0x80b   :  { %v1074_v61 = vpop.f32.mrb[4].mxu0 }
 0x80c   :  { %v1792_v62 = vpop.f32.mrb[5].mxu0 }
 0x8a8   :  { %v1228_v63 = vpop.f32.mrb[6].mxu0 }
 0x8a9   :  { %v1802_v0 = vpop.f32.mrb[7].mxu0  ;;  %v1310_v1 = vsel %vm168_vm2, %v1228_v63, -inf }
 0x8aa   :  { %1311 = vmax.xlane.f32.xlu0 %v1310_v1 }
 0x8b1   :  { %v1150_v2 = vpop.f32.mrb[18].mxu1 }
 0x8b2   :  { %v1797_v3 = vpop.f32.mrb[19].mxu1 }
 0x8b5   :  { %v1306_v4 = vpop.f32.mrb[20].mxu1 }
 0x8b6   :  { %v1807_v5 = vpop.f32.mrb[21].mxu1  ;;  %v1313_v6 = vsel %vm168_vm2, %v1306_v4, -inf }
 0x8b7   :  { %1314 = vmax.xlane.f32.xlu1 %v1313_v6 }
 0x8c8   :  { %1332 = vrot.lane.b32.xlu1 %v2122_v24, %s2025_s16 }
 0x8cc   :  { %1486 = vrot.lane.b32.xlu1 %v2201_v34, %s2011_s6 }
 0x8d0   :  { %1488 = vrot.lane.b32.xlu1 %v2204_v37, %s2011_s6 }
 0x8d4   :  { %1496 = vrot.lane.b32.xlu1 %v1150_v2, %s2026_s1 }
 0x937   :  { %v1312_v20 = vpop.xlane.xlu0 %1311 }
 0x938   :  { %v1316_v7 = vsub.f32 %v1228_v63, %v1312_v20 }
 0x93a   :  { %v1318_v8 = vmul.f32 1.442695, %v1316_v7 }
 0x93c   :  { %1906 = vpow2.f32 %v1318_v8 }
 0x944   :  { %v1315_v9 = vpop.xlane.xlu1 %1314 }
 0x945   :  { %v1317_v10 = vsub.f32 %v1306_v4, %v1315_v9 }
 0x946   :  { %v1907_v11 = vpop.eup %1906 }
 0x947   :  { %v1320_v12 = vmul.f32 1.442695, %v1317_v10  ;;  %v1322_v13 = vsel %vm168_vm2, %v1907_v11, 0.0 }
 0x948   :  { %1323 = vadd.xlane.f32.xlu0 %v1322_v13  ;;  %v1333_v24 = vpop.permute.xlu1 %1332 }
 0x949   :  { %1908 = vpow2.f32 %v1320_v12  ;;  %1809 = vmatpush3.msra.mxu0 %v1333_v24 }
 0x94a   :  { %1854 = vmatprep.subr.bf16.mxu0 %v1853_v29 }
 0x94c   :  { %v1487_v35 = vpop.permute.xlu1 %1486 }
 0x94d   :  { %v1508_v37 = vsel %vm168_vm2, %v2168_v56, %v1487_v35  ;;  %v1656_v56 = vld [vmem:[%s2274_s4] ss:$0 sm:$0xff] }
 0x950   :  { %v1489_v41 = vpop.permute.xlu1 %1488 }
 0x951   :  { %v1509_v43 = vsel %vm168_vm2, %v2170_v58, %v1489_v41 }
 0x953   :  { %v1909_v14 = vpop.eup %1908 }
 0x954   :  { %v1325_v15 = vsel %vm168_vm2, %v1909_v14, 0.0  ;;  %v1497_v42 = vpop.permute.xlu1 %1496 }
 0x955   :  { %1326 = vadd.xlane.f32.xlu0 %v1325_v15  ;;  %v1512_v44 = vsel %vm1510_vm4, %v1509_v43, %v1497_v42 }
 0x96b   :  { %1408 = vrot.lane.b32.xlu0 %v2125_v25, %s2025_s16  ;;  %v1519_v25 = vld [vmem:[#allocation7 + $0x18] sm:$0xff] }
 0x96c   :  { %v1857_v30 = vpack.c.bf16 %v1519_v25, %v1518_v28 }
 0x96f   :  { %1494 = vrot.lane.b32.xlu0 %v1074_v61, %s2026_s1 }
 0x9d5   :  { %v1324_v16 = vpop.xlane.xlu0 %1323 }
 0x9d6   :  { %1910 = vrcp.f32 %v1324_v16 }
 0x9e0   :  { %v1911_v17 = vpop.eup %1910 }
 0x9e1   :  { %v1330_v18 = vmul.f32 %v1911_v17, %v1907_v11 }
 0x9e2   :  { %v1327_v19 = vpop.xlane.xlu0 %1326 }
 0x9e3   :  { %1912 = vrcp.f32 %v1327_v19  ;;  %1811 = vmatmul.mubr.msk.f32.vlgmr.msra.gmra.mrb[8].mxu0 %vm168_vm2, %v1330_v18 }
 0x9e4   :  { %1856 = vmatpush3.bf16.msra.mxu0 %v1853_v29 }
 0x9e5   :  { %1858 = vmatprep.subr.bf16.mxu0 %v1857_v30 }
 0x9e6   :  { %v1409_v21 = vpop.permute.xlu0 %1408 }
 0x9e7   :  { %1814 = vmatpush3.msra.mxu1 %v1409_v21 }
 0x9e8   :  { %1860 = vmatpush3.bf16.msra.mxu0 %v1857_v30 }
 0x9ea   :  { %v1495_v36 = vpop.permute.xlu0 %1494 }
 0x9eb   :  { %v1511_v38 = vsel %vm1510_vm4, %v1508_v37, %v1495_v36 }
 0x9ed   :  { %v1913_v22 = vpop.eup %1912 }
 0x9ee   :  { %v1331_v23 = vmul.f32 %v1913_v22, %v1909_v14 }
 0x9f0   :  { %1816 = vmatmul.mubr.msk.f32.vlgmr.msra.gmra.mrb[22].mxu1 %vm168_vm2, %v1331_v23 }
 0xab6   :  { %v1404_v31 = vpop.f32.mrb[8].mxu0 }
 0xab7   :  { %1502 = vrot.lane.b32.xlu0 %v1404_v31, %s2027_s17  ;;  %v1812_v32 = vpop.f32.mrb[9].mxu0 }
 0xac3   :  { %v1480_v33 = vpop.f32.mrb[22].mxu1 }
 0xac4   :  { %1504 = vrot.lane.b32.xlu1 %v1480_v33, %s2027_s17  ;;  %v1817_v34 = vpop.f32.mrb[23].mxu1 }
 0xb29   :  { %v1503_v39 = vpop.permute.xlu0 %1502 }
 0xb2a   :  { %v1514_v40 = vsel %vm1513_vm3, %v1511_v38, %v1503_v39 }
 0xb2b   :  { %1826 = vmatprep.mubr.msk.f32.mxu0 %vm1527_vm5, %v1514_v40 }
 0xb36   :  { %v1505_v45 = vpop.permute.xlu1 %1504 }
 0xb37   :  { %v1515_v46 = vsel %vm1513_vm3, %v1512_v44, %v1505_v45 }
 0xb38   :  { %1827 = vmatmul.mubr.msk.f32.vlgmr.msra.gmra.mrb[10].mxu0 %vm1527_vm5, %v1515_v46 }
 0xc0b   :  { %v1828_v47 = vpop.f32.mrb[10].mxu0 }
 0xc0c   :  { %v1606_v48 = vadd.f32 %v1828_v47, %v1656_v56  ;;  %v1600_v49 = vpop.f32.mrb[11].mxu0 }
 0xc0d   :  { %v1601_v50 = vadd.f32 %v1656_v56, %v1600_v49 }
 0xc0e   :  { %1610 = vst.msk [vmem:[#allocation8 + $0x8] sm:$0xff] %vm1527_vm5, %v1606_v48 }
 0xc0f   :  { %1609 = vst.msk [vmem:[#allocation8] sm:$0xff] %vm1527_vm5, %v1601_v50 }
 0xc10   :  { %1991 = shalt.err (!%p1988_p0)
}
 0xc11   :  { %s1992_s25 = scalar_lea.hbm %s2275_s5, 256 }
 0xc12   :  { %p1993_p1 = scmp.ne.s32.totalorder %s2275_s5, %s1992_s25  ;;  %p1996_p2 = scmp.lt.u32.totalorder %s1992_s25, %s2275_s5 }
 0xc14   :  { %p1998_p3 = pnand %p1996_p2, %p1993_p1 }
 0xc16   :  { %2001 = shalt.err (!%p1998_p3)
}
 0xc17   :  { %1622 = dma.vmem_to_hbm [thread:$0]  %s1617_s22, 256, %s2275_s5, [#allocation4], %s2010_s30, %s2010_s30, %s2011_s6  }
 0xc18   :  { %2006 = dma.done.wait [#allocation4], 256  }
 0xc19   :  { %2007 = vsyncadd [#allocation4], 4294967040 }
 0xc1a   :  { %1626 = vsyncpa [#allocation3], 1 }
 0xc1b   :  { %1627 = vsyncpa [#allocation6], 1 }
 0xc1c   :  { %1628 = vsyncpa [#allocation4], 1 }

</bundles_post_ra>
